<compile_context>
chip_gen: v6e
topology: v6e:2x2x1
jax: 0.10.0
libtpu: 0.0.40
codegen_flags: <defaults>
</compile_context>

<pallas_src>
import functools
import math

import jax
import jax.numpy as jnp
from jax.experimental import pallas as pl
from jax.experimental.pallas import tpu as pltpu

_LANE = 128
_VMEM_BUDGET = 24 * 1024 * 1024   # per-call working-set target (safe on v7x's 64 MiB)
_VMEM_LIMIT = 64 * 1024 * 1024    # raised scoped-VMEM limit (<= physical on all gens)


def _round_up(x, m):
    return (x + m - 1) // m * m


def _pick_tile(n, cap):
    """Largest multiple of 128 that divides n (n % 128 == 0) and is <= cap."""
    t = max(_LANE, (min(cap, n) // _LANE) * _LANE)
    while n % t:
        t -= _LANE
    return t


def _pad2(a, rows, cols, dtype):
    a = a.astype(dtype)
    r, c = a.shape
    if (r, c) == (rows, cols):
        return a
    return jnp.pad(a, ((0, rows - r), (0, cols - c)))


# ---------------------------------------------------------------------------
# Kernels
# ---------------------------------------------------------------------------
def _fused_kernel(x_ref, w_ref, b_ref, adj_ref, out_ref):
    # Y = A @ (X @ W + b), everything VMEM-resident.
    h = jnp.dot(x_ref[...], w_ref[...], preferred_element_type=jnp.float32)
    h = (h + b_ref[...]).astype(adj_ref.dtype)     # bf16 H for the second MXU pass
    out_ref[...] = jnp.dot(adj_ref[...], h,
                           preferred_element_type=jnp.float32).astype(out_ref.dtype)


def _proj_kernel(x_ref, w_ref, b_ref, h_ref):
    # H = X @ W + b  (row tiled, fully parallel)
    h = jnp.dot(x_ref[...], w_ref[...], preferred_element_type=jnp.float32)
    h_ref[...] = (h + b_ref[...]).astype(h_ref.dtype)


def _agg_kernel_resident(adj_ref, h_ref, out_ref):
    # Y = A @ H with H fully VMEM-resident; accumulate directly into the f32
    # output block (its index_map ignores k, so it stays resident across k).
    k = pl.program_id(1)
    tk = adj_ref.shape[1]

    @pl.when(k == 0)
    def _():
        out_ref[...] = jnp.zeros_like(out_ref)

    start = pl.multiple_of(k * tk, tk)
    out_ref[...] += jnp.dot(adj_ref[...], h_ref[pl.ds(start, tk), :],
                            preferred_element_type=jnp.float32)


def _agg_kernel_streamed(adj_ref, h_ref, out_ref):
    # Y = A @ H with H streamed in K-slabs (large-graph fallback).
    k = pl.program_id(1)

    @pl.when(k == 0)
    def _():
        out_ref[...] = jnp.zeros_like(out_ref)

    out_ref[...] += jnp.dot(adj_ref[...], h_ref[...],
                            preferred_element_type=jnp.float32)


# ---------------------------------------------------------------------------
# Wrapper
# ---------------------------------------------------------------------------
def graph_convolution(x, adj, w, b, *, use_bf16=True, force_tiled=False):
    """Pallas implementation of GraphConvolution.forward (eval mode).

    x:   [N, in_features]              float32
    adj: [N, N]                        float32
    w:   [in_features, out_features]   (PyTorch Linear weight, transposed)
    b:   [out_features]
    returns [N, out_features] float32
    """
    n, in_dim = x.shape
    out_dim = w.shape[1]
    assert adj.shape == (n, n)
    assert w.shape[0] == in_dim and b.shape == (out_dim,)

    cdt = jnp.bfloat16 if use_bf16 else jnp.float32
    isz = jnp.dtype(cdt).itemsize

    n_pad = _round_up(n, _LANE)
    in_pad = _round_up(in_dim, _LANE)
    out_pad = _round_up(out_dim, _LANE)

    x_p = _pad2(x, n_pad, in_pad, cdt)
    adj_p = _pad2(adj, n_pad, n_pad, cdt)
    w_p = _pad2(w, in_pad, out_pad, cdt)
    b_p = _pad2(b.reshape(1, -1), 1, out_pad, jnp.float32)

    params = functools.partial(pltpu.CompilerParams, vmem_limit_bytes=_VMEM_LIMIT)

    # ------------- small-graph fast path: single fused VMEM-resident call ----
    fused_bytes = (
        2 * isz * (n_pad * n_pad + n_pad * in_pad + in_pad * out_pad)  # A, X, W (dbl buf)
        + 2 * 4 * out_pad                                              # bias
        + 2 * 4 * n_pad * out_pad                                      # Y (dbl buf)
        + (4 + isz) * n_pad * out_pad                                  # H temporaries
    )
    if fused_bytes <= _VMEM_BUDGET and not force_tiled:
        cost = pl.CostEstimate(
            flops=2 * n_pad * out_pad * (in_pad + n_pad),
            transcendentals=0,
            bytes_accessed=isz * (n_pad * n_pad + n_pad * in_pad + in_pad * out_pad)
            + 4 * (out_pad + n_pad * out_pad),
        )
        y = pl.pallas_call(
            _fused_kernel,
            out_shape=jax.ShapeDtypeStruct((n_pad, out_pad), jnp.float32),
            grid_spec=pltpu.PrefetchScalarGridSpec(
                num_scalar_prefetch=0,
                grid=(1,),
                in_specs=[
                    pl.BlockSpec((n_pad, in_pad), lambda i: (0, 0)),     # X
                    pl.BlockSpec((in_pad, out_pad), lambda i: (0, 0)),   # W
                    pl.BlockSpec((1, out_pad), lambda i: (0, 0)),        # bias
                    pl.BlockSpec((n_pad, n_pad), lambda i: (0, 0)),      # A
                ],
                out_specs=pl.BlockSpec((n_pad, out_pad), lambda i: (0, 0)),
            ),
            compiler_params=params(dimension_semantics=("arbitrary",)),
            cost_estimate=cost,
        )(x_p, w_p, b_p, adj_p)
        return y[:n, :out_dim]

    # ------------- large-graph path: projection + K-tiled aggregation --------
    # projection H = X @ W + b
    tp = _pick_tile(n_pad, 512)
    while (2 * isz * (tp * in_pad + in_pad * out_pad + tp * out_pad)
           + 2 * 4 * out_pad) > _VMEM_BUDGET and tp > _LANE:
        tp = _pick_tile(n_pad, tp - _LANE)

    proj_cost = pl.CostEstimate(
        flops=2 * n_pad * in_pad * out_pad,
        transcendentals=0,
        bytes_accessed=isz * (n_pad * in_pad + (n_pad // tp) * in_pad * out_pad
                              + n_pad * out_pad) + 4 * out_pad,
    )
    h = pl.pallas_call(
        _proj_kernel,
        out_shape=jax.ShapeDtypeStruct((n_pad, out_pad), cdt),
        grid_spec=pltpu.PrefetchScalarGridSpec(
            num_scalar_prefetch=0,
            grid=(n_pad // tp,),
            in_specs=[
                pl.BlockSpec((tp, in_pad), lambda i: (i, 0)),        # X row tile
                pl.BlockSpec((in_pad, out_pad), lambda i: (0, 0)),   # W (full)
                pl.BlockSpec((1, out_pad), lambda i: (0, 0)),        # bias
            ],
            out_specs=pl.BlockSpec((tp, out_pad), lambda i: (i, 0)),
        ),
        compiler_params=params(dimension_semantics=("parallel",)),
        cost_estimate=proj_cost,
    )(x_p, w_p, b_p)

    # aggregation Y = A @ H
    h_bytes = n_pad * out_pad * isz
    h_resident = 2 * h_bytes <= 8 * 1024 * 1024   # keep H fully in VMEM if modest

    def agg_vmem(tm_, tk_):
        a = 2 * tm_ * tk_ * isz
        hh = 2 * h_bytes if h_resident else 2 * tk_ * out_pad * isz
        o = 2 * tm_ * out_pad * 4
        return a + hh + o

    tm = _pick_tile(n_pad, 512)
    tk = _pick_tile(n_pad, 512)
    while agg_vmem(tm, tk) > _VMEM_BUDGET and tk > _LANE:
        tk = _pick_tile(n_pad, tk - _LANE)
    while agg_vmem(tm, tk) > _VMEM_BUDGET and tm > _LANE:
        tm = _pick_tile(n_pad, tm - _LANE)

    if h_resident:
        agg_kernel = _agg_kernel_resident
        h_spec = pl.BlockSpec((n_pad, out_pad), lambda i, k: (0, 0))  # resident
        h_reads = 1
    else:
        agg_kernel = _agg_kernel_streamed
        h_spec = pl.BlockSpec((tk, out_pad), lambda i, k: (k, 0))     # K-slab stream
        h_reads = n_pad // tm

    agg_cost = pl.CostEstimate(
        flops=2 * n_pad * n_pad * out_pad,
        transcendentals=0,
        bytes_accessed=isz * (n_pad * n_pad + h_reads * n_pad * out_pad)
        + 4 * n_pad * out_pad,
    )
    y = pl.pallas_call(
        agg_kernel,
        out_shape=jax.ShapeDtypeStruct((n_pad, out_pad), jnp.float32),
        grid_spec=pltpu.PrefetchScalarGridSpec(
            num_scalar_prefetch=0,
            grid=(n_pad // tm, n_pad // tk),
            in_specs=[
                pl.BlockSpec((tm, tk), lambda i, k: (i, k)),          # A tile
                h_spec,                                               # H
            ],
            out_specs=pl.BlockSpec((tm, out_pad), lambda i, k: (i, 0)),
        ),
        compiler_params=params(dimension_semantics=("parallel", "arbitrary")),
        cost_estimate=agg_cost,
    )(adj_p, h)

    return y[:n, :out_dim]


def reference(x, adj, w, b):
    return adj @ (x @ w + b[None, :])


if __name__ == "__main__":
    # Small shapes consistent with the module: N nodes, in/out feature dims.
    N, IN_DIM, OUT_DIM = 16, 32, 32

    key = jax.random.PRNGKey(0)
    kx, kadj, kw, kb = jax.random.split(key, 4)

    x = jax.random.normal(kx, (N, IN_DIM), dtype=jnp.float32)
    adj = jax.random.uniform(kadj, (N, N), dtype=jnp.float32)

    # Deterministic parameter init (module's reset_parameters never matches
    # '1.weight', so PyTorch keeps default Linear init; exact values are
    # irrelevant to the kernel — just deterministic here).
    bound_w = math.sqrt(6.0 / (IN_DIM + OUT_DIM))
    w = jax.random.uniform(kw, (IN_DIM, OUT_DIM), dtype=jnp.float32,
                           minval=-bound_w, maxval=bound_w)
    bound_b = 1.0 / math.sqrt(IN_DIM)
    b = jax.random.uniform(kb, (OUT_DIM,), dtype=jnp.float32,
                           minval=-bound_b, maxval=bound_b)

    ref = reference(x, adj, w, b)

    # TODO(synk): Dropout is identity at inference; training-mode random masking
    # is not implemented.  The stored activation is never applied in forward.

    # Fast (fused, VMEM-resident) path — the one GSR-Net-sized graphs hit.
    out_fused = jax.block_until_ready(graph_convolution(x, adj, w, b))
    assert out_fused.shape == (N, OUT_DIM)
    assert jnp.allclose(out_fused, ref, atol=5e-2, rtol=3e-2), "fused path mismatch"

    # Tiled (large-graph) path exercised at small size for correctness.
    out_tiled = jax.block_until_ready(
        graph_convolution(x, adj, w, b, force_tiled=True))
    assert jnp.allclose(out_tiled, ref, atol=5e-2, rtol=3e-2), "tiled path mismatch"

    print("KERNEL_OK")
</pallas_src>

<mosaic_0001>
module attributes {stable_mosaic.version = 11 : i64} {
  func.func @_fused_kernel(%arg0: i32, %arg1: memref<128x128xbf16, #tpu.memory_space<vmem>>, %arg2: memref<128x128xbf16, #tpu.memory_space<vmem>>, %arg3: memref<1x128xf32, #tpu.memory_space<vmem>>, %arg4: memref<128x128xbf16, #tpu.memory_space<vmem>>, %arg5: memref<128x128xf32, #tpu.memory_space<vmem>>) attributes {dimension_semantics = [#tpu.dimension_semantics<arbitrary>], iteration_bounds = array<i64: 1>, scalar_prefetch = 0 : i64, scratch_operands = 0 : i64, tpu.core_type = #tpu.core_type<tc>, window_params = [{pipeline_mode = #tpu.pipeline_mode<synchronous>, transform_indices = @transform_0, window_bounds = array<i64: 128, 128>}, {pipeline_mode = #tpu.pipeline_mode<synchronous>, transform_indices = @transform_1, window_bounds = array<i64: 128, 128>}, {pipeline_mode = #tpu.pipeline_mode<synchronous>, transform_indices = @transform_2, window_bounds = array<i64: 1, 128>}, {pipeline_mode = #tpu.pipeline_mode<synchronous>, transform_indices = @transform_3, window_bounds = array<i64: 128, 128>}, {pipeline_mode = #tpu.pipeline_mode<synchronous>, transform_indices = @transform_4, window_bounds = array<i64: 128, 128>}]} {
    %c0 = arith.constant 0 : index
    %c0_0 = arith.constant 0 : index
    %0 = vector.load %arg1[%c0, %c0_0] : memref<128x128xbf16, #tpu.memory_space<vmem>>, vector<128x128xbf16>
    %c0_1 = arith.constant 0 : index
    %c0_2 = arith.constant 0 : index
    %1 = vector.load %arg2[%c0_1, %c0_2] : memref<128x128xbf16, #tpu.memory_space<vmem>>, vector<128x128xbf16>
    %cst = arith.constant dense<0.000000e+00> : vector<128x128xf32>
    %2 = tpu.matmul %0, %1, %cst {dimension_numbers = #tpu.dot_dimension_numbers<[1], [0], [0], [1], [0, 0, 1, 1], [], []>} : vector<128x128xbf16>, vector<128x128xbf16>, vector<128x128xf32> -> vector<128x128xf32>
    %c0_3 = arith.constant 0 : index
    %c0_4 = arith.constant 0 : index
    %3 = vector.load %arg3[%c0_3, %c0_4] : memref<1x128xf32, #tpu.memory_space<vmem>>, vector<1x128xf32>
    %4 = vector.broadcast %3 : vector<1x128xf32> to vector<128x128xf32>
    %5 = arith.addf %2, %4 : vector<128x128xf32>
    %6 = arith.truncf %5 : vector<128x128xf32> to vector<128x128xbf16>
    %c0_5 = arith.constant 0 : index
    %c0_6 = arith.constant 0 : index
    %7 = vector.load %arg4[%c0_5, %c0_6] : memref<128x128xbf16, #tpu.memory_space<vmem>>, vector<128x128xbf16>
    %cst_7 = arith.constant dense<0.000000e+00> : vector<128x128xf32>
    %8 = tpu.matmul %7, %6, %cst_7 {dimension_numbers = #tpu.dot_dimension_numbers<[1], [0], [0], [1], [0, 0, 1, 1], [], []>} : vector<128x128xbf16>, vector<128x128xbf16>, vector<128x128xf32> -> vector<128x128xf32>
    %c0_8 = arith.constant 0 : index
    %c0_9 = arith.constant 0 : index
    %9 = vector.load %arg5[%c0_8, %c0_9] : memref<128x128xf32, #tpu.memory_space<vmem>>, vector<128x128xf32>
    tpu.vector_store %arg5[%c0_8, %c0_9], %8 {strides = array<i32>} : memref<128x128xf32, #tpu.memory_space<vmem>>, vector<128x128xf32>,
    return
  }
  func.func @transform_0(%arg0: i32) -> (i32, i32) {
    %c0_i32 = arith.constant 0 : i32
    %c0_i32_0 = arith.constant 0 : i32
    %c0_i32_1 = arith.constant 0 : i32
    return %c0_i32, %c0_i32_0 : i32, i32
  }
  func.func @transform_1(%arg0: i32) -> (i32, i32) {
    %c0_i32 = arith.constant 0 : i32
    %c0_i32_0 = arith.constant 0 : i32
    %c0_i32_1 = arith.constant 0 : i32
    return %c0_i32, %c0_i32_0 : i32, i32
  }
  func.func @transform_2(%arg0: i32) -> (i32, i32) {
    %c0_i32 = arith.constant 0 : i32
    %c0_i32_0 = arith.constant 0 : i32
    %c0_i32_1 = arith.constant 0 : i32
    return %c0_i32, %c0_i32_0 : i32, i32
  }
  func.func @transform_3(%arg0: i32) -> (i32, i32) {
    %c0_i32 = arith.constant 0 : i32
    %c0_i32_0 = arith.constant 0 : i32
    %c0_i32_1 = arith.constant 0 : i32
    return %c0_i32, %c0_i32_0 : i32, i32
  }
  func.func @transform_4(%arg0: i32) -> (i32, i32) {
    %c0_i32 = arith.constant 0 : i32
    %c0_i32_0 = arith.constant 0 : i32
    %c0_i32_1 = arith.constant 0 : i32
    return %c0_i32, %c0_i32_0 : i32, i32
  }
}

</mosaic_0001>

<bundles_post_ra>
// kernel: tpu_custom_call.1
= control target key start
LH: loop header
LB: loop body
LE: loop exit
PB: predicated region body
PF: predicated region fallthrough
CT: control target
= control target key end

     0   :  { %9 = vsyncpa [#allocation3], 0  ;;  %s782_s0 = inlined_call_operand.hbm [shape: bf16[128,128], index: 0, kind: input, shape index: {}]   ;;  %s783_s1 = inlined_call_operand.hbm [shape: bf16[128,128], index: 1, kind: input, shape index: {}]   ;;  %s784_s2 = inlined_call_operand.vmem [shape: f32[1,128], index: 2, kind: input, shape index: {}]   ;;  %s785_s3 = inlined_call_operand.hbm [shape: bf16[128,128], index: 3, kind: input, shape index: {}]   ;;  %s786_s4 = inlined_call_operand.hbm [shape: f32[128,128], index: 4, kind: output, shape index: {}]  }
   0x1   :  { %10 = vsyncpa [#allocation6], 0 }
   0x2   :  { %11 = vsyncpa [#allocation4], 0  ;;  %s734_s15 = smov [#allocation5]   ;;  %s735_s17 = smov [#allocation2]  }
   0x3   :  { %s29_s16 = sshll.u32 %s734_s15, 4  ;;  %s17_s18 = sshll.u32 %s735_s17, 4  ;;  %s30_s16 = int_to_ptr.vmem [resolvable:$true] %s29_s16  ;;  %s18_s18 = int_to_ptr.vmem [resolvable:$true] %s17_s18 }
   0x4   :  { %s656_s19 = scalar_lea.vmem %s30_s16, 1024  ;;  %p661_p1 = scmp.lt.s32.totalorder %s30_s16, %s30_s16 }
   0x5   :  { %p657_p0 = scmp.ne.s32.totalorder %s30_s16, %s656_s19  ;;  %p662_p2 = scmp.lt.s32.totalorder %s656_s19, %s656_s19 }
   0x7   :  { %p663_p3 = por %p662_p2, %p661_p1 }
   0x9   :  { %p664_p4 = pnand %p663_p3, %p657_p0 }
   0xb   :  { %667 = shalt.err (!%p664_p4)
}
   0xc   :  { %s736_s20 = smov 64   ;;  %s737_s21 = smov 4  }
   0xd   :  { %35 = dma.hbm_to_vmem [thread:$0]  %s783_s1, 1024, %s30_s16, [#allocation6], %s736_s20, %s736_s20, %s737_s21  }
   0xe   :  { %s676_s24 = scalar_lea.vmem %s18_s18, 1024  ;;  %p681_p6 = scmp.lt.s32.totalorder %s18_s18, %s18_s18 }
   0xf   :  { %p677_p5 = scmp.ne.s32.totalorder %s18_s18, %s676_s24  ;;  %p682_p7 = scmp.lt.s32.totalorder %s676_s24, %s676_s24 }
  0x11   :  { %p683_p8 = por %p682_p7, %p681_p6 }
  0x13   :  { %p684_p9 = pnand %p683_p8, %p677_p5 }
  0x15   :  { %687 = shalt.err (!%p684_p9)
}
  0x16   :  { %23 = dma.hbm_to_vmem [thread:$0]  %s782_s0, 1024, %s18_s18, [#allocation3], %s736_s20, %s736_s20, %s737_s21  }
  0x17   :  { %s738_s27 = smov [#allocation7]  }
  0x18   :  { %s43_s28 = sshll.u32 %s738_s27, 4  ;;  %s44_s28 = int_to_ptr.vmem [resolvable:$true] %s43_s28 }
  0x19   :  { %s696_s29 = scalar_lea.vmem %s44_s28, 1024  ;;  %p701_p11 = scmp.lt.s32.totalorder %s44_s28, %s44_s28 }
  0x1a   :  { %p697_p10 = scmp.ne.s32.totalorder %s44_s28, %s696_s29  ;;  %p702_p12 = scmp.lt.s32.totalorder %s696_s29, %s696_s29 }
  0x1c   :  { %p703_p13 = por %p702_p12, %p701_p11 }
  0x1e   :  { %p704_p0 = pnand %p703_p13, %p697_p10 }
  0x20   :  { %707 = shalt.err (!%p704_p0)
}
  0x21   :  { %49 = dma.hbm_to_vmem [thread:$0]  %s785_s3, 1024, %s44_s28, [#allocation6], %s736_s20, %s736_s20, %s737_s21  }
  0x22   :  { %728 = dma.done.wait [#allocation3], 1024  }
  0x23   :  { %729 = vsyncadd [#allocation3], 4294966272 }
  0x24   :  { %730 = dma.done.wait [#allocation6], 2048  }
  0x25   :  { %731 = vsyncadd [#allocation6], 4294965248  ;;  %v624_v0 = vld [vmem:[#allocation5 + $0x38] sm:$0xff]   ;;  %v625_v1 = vld [vmem:[#allocation5 + $0x30] sm:$0xff]  }
  0x26   :  { %552 = vmatprep.subr.bf16.mxu0 %v624_v0  ;;  %v626_v2 = vld [vmem:[#allocation5 + $0x28] sm:$0xff]   ;;  %v627_v3 = vld [vmem:[#allocation5 + $0x20] sm:$0xff]   ;;  %v628_v5 = vld [vmem:[#allocation5 + $0x18] sm:$0xff]  }
  0x27   :  { %553 = vmatpush3.bf16.msra.mxu0 %v624_v0  ;;  %v632_v4 = vld [vmem:[#allocation2] sm:$0xff]   ;;  %v629_v6 = vld [vmem:[#allocation5 + $0x10] sm:$0xff]   ;;  %v630_v7 = vld [vmem:[#allocation5 + $0x8] sm:$0xff]  }
  0x28   :  { %554 = vmatprep.subr.bf16.mxu0 %v625_v1  ;;  %568 = vmatprep.mubr.bf16.mxu0 %v632_v4  ;;  %v631_v8 = vld [vmem:[#allocation5] sm:$0xff]   ;;  %v633_v9 = vld [vmem:[#allocation2 + $0x8] sm:$0xff]   ;;  %v634_v10 = vld [vmem:[#allocation2 + $0x10] sm:$0xff]  }
  0x29   :  { %v635_v11 = vld [vmem:[#allocation2 + $0x18] sm:$0xff]   ;;  %v636_v12 = vld [vmem:[#allocation2 + $0x20] sm:$0xff]   ;;  %v637_v13 = vld [vmem:[#allocation2 + $0x28] sm:$0xff]  }
  0x2a   :  { %v638_v14 = vld [vmem:[#allocation2 + $0x30] sm:$0xff]   ;;  %v639_v15 = vld [vmem:[#allocation2 + $0x38] sm:$0xff]   ;;  %v640_v16 = vld [vmem:[#allocation7] sm:$0xff]  }
  0x2b   :  { %555 = vmatpush3.bf16.msra.mxu0 %v625_v1  ;;  %600 = vmatprep.mubr.bf16.mxu1 %v640_v16  ;;  %v495_v31 = vld [vmem:[%s784_s2] ss:$0 sm:$0xff]  ;;  %v641_v58 = vld [vmem:[#allocation7 + $0x8] sm:$0xff]   ;;  %v642_v59 = vld [vmem:[#allocation7 + $0x10] sm:$0xff]   ;;  %s739_s2 = smov [#allocation8]  }
  0x2c   :  { %556 = vmatprep.subr.bf16.mxu0 %v626_v2  ;;  %v643_v60 = vld [vmem:[#allocation7 + $0x18] sm:$0xff]   ;;  %v644_v61 = vld [vmem:[#allocation7 + $0x20] sm:$0xff]   ;;  %v645_v62 = vld [vmem:[#allocation7 + $0x28] sm:$0xff]   ;;  %s482_s5 = sshll.u32 %s739_s2, 4  ;;  %s483_s5 = int_to_ptr.vmem [resolvable:$true] %s482_s5 }
  0x2d   :  { %v646_v63 = vld [vmem:[#allocation7 + $0x30] sm:$0xff]   ;;  %v647_v0 = vld [vmem:[#allocation7 + $0x38] sm:$0xff]   ;;  %s708_s6 = scalar_lea.vmem %s483_s5, 2048  ;;  %p713_p2 = scmp.lt.s32.totalorder %s483_s5, %s483_s5 }
  0x2e   :  { %p709_p1 = scmp.ne.s32.totalorder %s483_s5, %s708_s6  ;;  %p714_p3 = scmp.lt.s32.totalorder %s708_s6, %s708_s6 }
  0x2f   :  { %557 = vmatpush3.bf16.msra.mxu0 %v626_v2 }
  0x30   :  { %558 = vmatprep.subr.bf16.mxu0 %v627_v3  ;;  %p715_p4 = por %p714_p3, %p713_p2 }
  0x32   :  { %p716_p5 = pnand %p715_p4, %p709_p1 }
  0x33   :  { %559 = vmatpush3.bf16.msra.mxu0 %v627_v3 }
  0x34   :  { %560 = vmatprep.subr.bf16.mxu0 %v628_v5 }
  0x37   :  { %561 = vmatpush3.bf16.msra.mxu0 %v628_v5 }
  0x38   :  { %562 = vmatprep.subr.bf16.mxu0 %v629_v6 }
  0x3b   :  { %563 = vmatpush3.bf16.msra.mxu0 %v629_v6 }
  0x3c   :  { %564 = vmatprep.subr.bf16.mxu0 %v630_v7 }
  0x3f   :  { %565 = vmatpush3.bf16.msra.mxu0 %v630_v7 }
  0x40   :  { %566 = vmatprep.subr.bf16.mxu0 %v631_v8 }
  0x43   :  { %567 = vmatpush3.bf16.msra.mxu0 %v631_v8 }
  0x46   :  { %569 = vmatmul.mubr.bf16.vlgmr.msra.gmra.mxu0 %v633_v9 }
  0x47   :  { %572 = vmatprep.mubr.bf16.mxu0 %v634_v10 }
  0x4e   :  { %573 = vmatmul.mubr.bf16.gmra.mxu0 %v635_v11 }
  0x4f   :  { %576 = vmatprep.mubr.bf16.mxu0 %v636_v12 }
  0x56   :  { %577 = vmatmul.mubr.bf16.gmra.mxu0 %v637_v13 }
  0x57   :  { %580 = vmatprep.mubr.bf16.mxu0 %v638_v14 }
  0x5e   :  { %581 = vmatmul.mubr.bf16.gmra.mxu0 %v639_v15 }
 0x106   :  { %v570_v17 = vpop.f32.mrf.mxu0 }
 0x107   :  { %v238_v53 = vadd.f32 %v570_v17, %v495_v31 }
 0x108   :  { %v229_v18 = vpop.f32.mrf.mxu0 }
 0x109   :  { %v230_v56 = vadd.f32 %v495_v31, %v229_v18 }
 0x10a   :  { %v571_v19 = vpop.f32.mrf.mxu0 }
 0x10b   :  { %v241_v51 = vadd.f32 %v571_v19, %v495_v31 }
 0x10c   :  { %v232_v20 = vpop.f32.mrf.mxu0 }
 0x10d   :  { %v293_v54 = vpack.c.bf16 %v241_v51, %v238_v53  ;;  %v233_v55 = vadd.f32 %v495_v31, %v232_v20 }
 0x10e   :  { %v574_v21 = vpop.f32.mrf.mxu0 }
 0x10f   :  { %v254_v47 = vadd.f32 %v574_v21, %v495_v31  ;;  %v292_v57 = vpack.c.bf16 %v233_v55, %v230_v56 }
 0x110   :  { %v245_v22 = vpop.f32.mrf.mxu0 }
 0x111   :  { %v246_v50 = vadd.f32 %v495_v31, %v245_v22 }
 0x112   :  { %v575_v23 = vpop.f32.mrf.mxu0 }
 0x113   :  { %v257_v45 = vadd.f32 %v575_v23, %v495_v31 }
 0x114   :  { %v248_v24 = vpop.f32.mrf.mxu0 }
 0x115   :  { %v295_v48 = vpack.c.bf16 %v257_v45, %v254_v47  ;;  %v249_v49 = vadd.f32 %v495_v31, %v248_v24 }
 0x116   :  { %v578_v25 = vpop.f32.mrf.mxu0 }
 0x117   :  { %v270_v41 = vadd.f32 %v578_v25, %v495_v31  ;;  %v294_v52 = vpack.c.bf16 %v249_v49, %v246_v50 }
 0x118   :  { %v261_v26 = vpop.f32.mrf.mxu0 }
 0x119   :  { %v262_v44 = vadd.f32 %v495_v31, %v261_v26 }
 0x11a   :  { %v579_v27 = vpop.f32.mrf.mxu0 }
 0x11b   :  { %v273_v39 = vadd.f32 %v579_v27, %v495_v31 }
 0x11c   :  { %v264_v28 = vpop.f32.mrf.mxu0 }
 0x11d   :  { %v297_v42 = vpack.c.bf16 %v273_v39, %v270_v41  ;;  %v265_v43 = vadd.f32 %v495_v31, %v264_v28 }
 0x11e   :  { %v582_v29 = vpop.f32.mrf.mxu0 }
 0x11f   :  { %v286_v33 = vadd.f32 %v582_v29, %v495_v31  ;;  %v296_v46 = vpack.c.bf16 %v265_v43, %v262_v44 }
 0x120   :  { %v277_v30 = vpop.f32.mrf.mxu0 }
 0x121   :  { %v278_v36 = vadd.f32 %v495_v31, %v277_v30 }
 0x122   :  { %v583_v32 = vpop.f32.mrf.mxu0 }
 0x123   :  { %v289_v34 = vadd.f32 %v583_v32, %v495_v31 }
 0x124   :  { %v280_v35 = vpop.f32.mrf.mxu0 }
 0x125   :  { %v281_v37 = vadd.f32 %v495_v31, %v280_v35  ;;  %v299_v38 = vpack.c.bf16 %v289_v34, %v286_v33 }
 0x127   :  { %v298_v40 = vpack.c.bf16 %v281_v37, %v278_v36  ;;  %584 = vmatprep.subr.bf16.mxu1 %v299_v38 }
 0x128   :  { %585 = vmatpush3.bf16.msra.mxu1 %v299_v38 }
 0x129   :  { %586 = vmatprep.subr.bf16.mxu1 %v298_v40 }
 0x12c   :  { %587 = vmatpush3.bf16.msra.mxu1 %v298_v40 }
 0x12d   :  { %588 = vmatprep.subr.bf16.mxu1 %v297_v42 }
 0x130   :  { %589 = vmatpush3.bf16.msra.mxu1 %v297_v42 }
 0x131   :  { %590 = vmatprep.subr.bf16.mxu1 %v296_v46 }
 0x134   :  { %591 = vmatpush3.bf16.msra.mxu1 %v296_v46 }
 0x135   :  { %592 = vmatprep.subr.bf16.mxu1 %v295_v48 }
 0x138   :  { %593 = vmatpush3.bf16.msra.mxu1 %v295_v48 }
 0x139   :  { %594 = vmatprep.subr.bf16.mxu1 %v294_v52 }
 0x13c   :  { %595 = vmatpush3.bf16.msra.mxu1 %v294_v52 }
 0x13d   :  { %596 = vmatprep.subr.bf16.mxu1 %v293_v54 }
 0x140   :  { %597 = vmatpush3.bf16.msra.mxu1 %v293_v54 }
 0x141   :  { %598 = vmatprep.subr.bf16.mxu1 %v292_v57 }
 0x144   :  { %599 = vmatpush3.bf16.msra.mxu1 %v292_v57 }
 0x147   :  { %601 = vmatmul.mubr.bf16.vlgmr.msra.gmra.mxu1 %v641_v58 }
 0x148   :  { %604 = vmatprep.mubr.bf16.mxu1 %v642_v59 }
 0x14f   :  { %605 = vmatmul.mubr.bf16.gmra.mxu1 %v643_v60 }
 0x150   :  { %608 = vmatprep.mubr.bf16.mxu1 %v644_v61 }
 0x157   :  { %609 = vmatmul.mubr.bf16.gmra.mxu1 %v645_v62 }
 0x158   :  { %612 = vmatprep.mubr.bf16.mxu1 %v646_v63 }
 0x15f   :  { %613 = vmatmul.mubr.bf16.gmra.mxu1 %v647_v0 }
 0x207   :  { %v602_v1 = vpop.f32.mrf.mxu1 }
 0x208   :  { %463 = vst [vmem:[#allocation8 + $0x10] sm:$0xff] %v602_v1 }
 0x209   :  { %v398_v2 = vpop.f32.mrf.mxu1 }
 0x20a   :  { %461 = vst [vmem:[#allocation8] sm:$0xff] %v398_v2 }
 0x20b   :  { %v603_v3 = vpop.f32.mrf.mxu1 }
 0x20c   :  { %464 = vst [vmem:[#allocation8 + $0x18] sm:$0xff] %v603_v3 }
 0x20d   :  { %v401_v4 = vpop.f32.mrf.mxu1 }
 0x20e   :  { %462 = vst [vmem:[#allocation8 + $0x8] sm:$0xff] %v401_v4 }
 0x20f   :  { %v606_v5 = vpop.f32.mrf.mxu1 }
 0x210   :  { %467 = vst [vmem:[#allocation8 + $0x30] sm:$0xff] %v606_v5 }
 0x211   :  { %v414_v6 = vpop.f32.mrf.mxu1 }
 0x212   :  { %465 = vst [vmem:[#allocation8 + $0x20] sm:$0xff] %v414_v6 }
 0x213   :  { %v607_v7 = vpop.f32.mrf.mxu1 }
 0x214   :  { %468 = vst [vmem:[#allocation8 + $0x38] sm:$0xff] %v607_v7 }
 0x215   :  { %v417_v8 = vpop.f32.mrf.mxu1 }
 0x216   :  { %466 = vst [vmem:[#allocation8 + $0x28] sm:$0xff] %v417_v8 }
 0x217   :  { %v610_v9 = vpop.f32.mrf.mxu1 }
 0x218   :  { %471 = vst [vmem:[#allocation8 + $0x50] sm:$0xff] %v610_v9 }
 0x219   :  { %v430_v10 = vpop.f32.mrf.mxu1 }
 0x21a   :  { %469 = vst [vmem:[#allocation8 + $0x40] sm:$0xff] %v430_v10 }
 0x21b   :  { %v611_v11 = vpop.f32.mrf.mxu1 }
 0x21c   :  { %472 = vst [vmem:[#allocation8 + $0x58] sm:$0xff] %v611_v11 }
 0x21d   :  { %v433_v12 = vpop.f32.mrf.mxu1 }
 0x21e   :  { %470 = vst [vmem:[#allocation8 + $0x48] sm:$0xff] %v433_v12 }
 0x21f   :  { %v614_v13 = vpop.f32.mrf.mxu1 }
 0x220   :  { %475 = vst [vmem:[#allocation8 + $0x70] sm:$0xff] %v614_v13 }
 0x221   :  { %v446_v14 = vpop.f32.mrf.mxu1 }
 0x222   :  { %473 = vst [vmem:[#allocation8 + $0x60] sm:$0xff] %v446_v14 }
 0x223   :  { %v615_v15 = vpop.f32.mrf.mxu1 }
 0x224   :  { %476 = vst [vmem:[#allocation8 + $0x78] sm:$0xff] %v615_v15 }
 0x225   :  { %v449_v16 = vpop.f32.mrf.mxu1 }
 0x226   :  { %474 = vst [vmem:[#allocation8 + $0x68] sm:$0xff] %v449_v16 }
 0x227   :  { %719 = shalt.err (!%p716_p5)
}
 0x228   :  { %s740_s7 = smov 128   ;;  %s741_s8 = smov 8  }
 0x229   :  { %488 = dma.vmem_to_hbm [thread:$0]  %s483_s5, 2048, %s786_s4, [#allocation4], %s740_s7, %s740_s7, %s741_s8  }
 0x22a   :  { %732 = dma.done.wait [#allocation4], 2048  }
 0x22b   :  { %733 = vsyncadd [#allocation4], 4294965248 }
 0x22c   :  { %492 = vsyncpa [#allocation3], 1 }
 0x22d   :  { %493 = vsyncpa [#allocation6], 1 }
 0x22e   :  { %494 = vsyncpa [#allocation4], 1 }

</bundles_post_ra>
